<compile_context>
chip_gen: v5e
topology: v5e:2x2
jax: 0.10.0
libtpu: 0.0.40
codegen_flags: <defaults>
</compile_context>

<pallas_src>
import jax
import jax.numpy as jnp
from jax.experimental import pallas as pl
from jax.experimental.pallas import tpu as pltpu


# ----------------------------- Pallas kernel -------------------------------

def _fused_block7_kernel(parent_ref, x_ref, adj_ref,
                         w1s_ref, w1n_ref, b1_ref,
                         w2s_ref, w2n_ref, b2_ref,
                         out_ref, h2_ref):
    """Fused: GraphConv -> GraphConv -> index-unpool, all resident on-chip.

    parent_ref : (NF,)   i32  SMEM   coarse parent of each fine node
    x_ref      : (N, CP) bf16 VMEM   padded node features (CP = 128 lanes)
    adj_ref    : (N, N)  bf16 VMEM   dense weighted adjacency A[dst, src]
    w*_ref     : (CP,CP) bf16 VMEM   padded W_self / W_nbr tiles
    b*_ref     : (1, CP) f32  VMEM   padded bias
    out_ref    : (NF,CP) f32  VMEM   padded fine-node output
    h2_ref     : (N, CP) f32  VMEM   scratch holding layer-2 activations
    """
    x = x_ref[...]                       # bf16
    a = adj_ref[...]                     # bf16

    # ---- layer 1: h1 = ReLU(x @ W1_self + (A @ x) @ W1_nbr + b1) ----
    ax = jnp.dot(a, x, preferred_element_type=jnp.float32)
    z1 = (jnp.dot(x, w1s_ref[...], preferred_element_type=jnp.float32)
          + jnp.dot(ax.astype(jnp.bfloat16), w1n_ref[...],
                    preferred_element_type=jnp.float32)
          + b1_ref[...])
    h1 = jnp.maximum(z1, 0.0)            # f32 epilogue (v5e VPU has no bf16)
    h1b = h1.astype(jnp.bfloat16)

    # ---- layer 2: h2 = ReLU(h1 @ W2_self + (A @ h1) @ W2_nbr + b2) ----
    ah1 = jnp.dot(a, h1b, preferred_element_type=jnp.float32)
    z2 = (jnp.dot(h1b, w2s_ref[...], preferred_element_type=jnp.float32)
          + jnp.dot(ah1.astype(jnp.bfloat16), w2n_ref[...],
                    preferred_element_type=jnp.float32)
          + b2_ref[...])
    h2_ref[...] = jnp.maximum(z2, 0.0)

    # ---- unpool: out[i] = h2[parent[i]]  (pure data movement, no MXU work) ----
    n_fine = out_ref.shape[0]

    @pl.loop(0, n_fine)
    def _(i):
        p = parent_ref[i]                                    # scalar from SMEM
        out_ref[pl.ds(i, 1), :] = h2_ref[pl.ds(p, 1), :]


# ------------------------------ thin wrapper -------------------------------

def _pad2(a, rows, cols):
    return jnp.pad(a, ((0, rows - a.shape[0]), (0, cols - a.shape[1])))


def pack_block7_params(params, c_pad=128):
    """One-time parameter packing (hoisted out of the per-call forward)."""
    return dict(
        w1s=_pad2(params["w1_self"], c_pad, c_pad).astype(jnp.bfloat16),
        w1n=_pad2(params["w1_nbr"], c_pad, c_pad).astype(jnp.bfloat16),
        b1=_pad2(params["b1"], 1, c_pad).astype(jnp.float32),
        w2s=_pad2(params["w2_self"], c_pad, c_pad).astype(jnp.bfloat16),
        w2n=_pad2(params["w2_nbr"], c_pad, c_pad).astype(jnp.bfloat16),
        b2=_pad2(params["b2"], 1, c_pad).astype(jnp.float32),
        c_out=params["w1_self"].shape[1],
    )


def conv_block7_forward(x, adj_bf16, pool_parent, packed, c_pad=128):
    """Full _ConvBlock7 forward: conv -> conv -> unpool, one fused kernel."""
    n, c_in = x.shape
    n_fine = pool_parent.shape[0]
    c_out = packed["c_out"]

    # per-call prep: only x (lane-dense pad + bf16 cast) and the parent indices
    xp = jnp.pad(x, ((0, 0), (0, c_pad - c_in))).astype(jnp.bfloat16)
    parent = pool_parent.astype(jnp.int32)

    flops = 2 * (2 * n * n * c_pad + 2 * 2 * n * c_pad * c_pad)   # two conv layers
    bytes_accessed = (2 * (xp.size + adj_bf16.size)                # bf16 inputs
                      + 2 * 4 * c_pad * c_pad * 4 + 2 * 4 * c_pad  # weights/bias
                      + 4 * n_fine + 4 * n_fine * c_pad)           # parent + out

    vmem = pl.BlockSpec(memory_space=pltpu.MemorySpace.VMEM)
    smem = pl.BlockSpec(memory_space=pltpu.MemorySpace.SMEM)

    out_p = pl.pallas_call(
        _fused_block7_kernel,
        out_shape=jax.ShapeDtypeStruct((n_fine, c_pad), jnp.float32),
        in_specs=[smem, vmem, vmem, vmem, vmem, vmem, vmem, vmem, vmem],
        out_specs=vmem,
        scratch_shapes=[pltpu.VMEM((n, c_pad), jnp.float32)],
        compiler_params=pltpu.CompilerParams(vmem_limit_bytes=32 * 1024 * 1024),
        cost_estimate=pl.CostEstimate(flops=flops, transcendentals=0,
                                      bytes_accessed=bytes_accessed),
    )(parent, xp, adj_bf16,
      packed["w1s"], packed["w1n"], packed["b1"],
      packed["w2s"], packed["w2n"], packed["b2"])

    return out_p[:, :c_out]


# ---------------------------------- main -----------------------------------

if __name__ == "__main__":
    key = jax.random.PRNGKey(0)
    N = 32        # coarse graph nodes (level-3 graph)
    N_FINE = 64   # fine graph nodes after unpooling (level-2 graph)
    C_IN = 48     # in_channels  (convN_7 = _ConvBlock7(48, 32))
    C_OUT = 32    # out_channels
    E = 96        # point-point edges

    ks = jax.random.split(key, 10)

    # node features
    x = jax.random.normal(ks[0], (N, C_IN), jnp.float32)

    # point-point graph: edge_index (src, dst) + scalar edge_attr,
    # densified into weighted adjacency A[dst, src] += w   (glue, not hot path)
    src = jax.random.randint(ks[1], (E,), 0, N)
    dst = jax.random.randint(ks[2], (E,), 0, N)
    edge_w = jax.random.uniform(ks[3], (E,), jnp.float32)
    adj = jnp.zeros((N, N), jnp.float32).at[dst, src].add(edge_w)
    adj_bf16 = adj.astype(jnp.bfloat16)   # packed once, reused every forward

    # deterministic parameter init (synthetic, no checkpoint)
    w1_self = 0.1 * jax.random.normal(ks[4], (C_IN, C_OUT), jnp.float32)
    w1_nbr = 0.1 * jax.random.normal(ks[5], (C_IN, C_OUT), jnp.float32)
    b1 = 0.1 * jax.random.normal(ks[6], (1, C_OUT), jnp.float32)
    w2_self = 0.1 * jax.random.normal(ks[7], (C_OUT, C_OUT), jnp.float32)
    w2_nbr = 0.1 * jax.random.normal(ks[8], (C_OUT, C_OUT), jnp.float32)
    b2 = 0.1 * jax.random.normal(ks[9], (1, C_OUT), jnp.float32)
    params = dict(w1_self=w1_self, w1_nbr=w1_nbr, b1=b1,
                  w2_self=w2_self, w2_nbr=w2_nbr, b2=b2)
    packed = pack_block7_params(params)   # one-time pad + bf16 pack

    # poolDataForward: each fine node gathers from one coarse parent
    pool_parent = jnp.arange(N_FINE, dtype=jnp.int32) % N

    out = conv_block7_forward(x, adj_bf16, pool_parent, packed)
    out = jax.block_until_ready(out)
    assert out.shape == (N_FINE, C_OUT)

    # reference with matching bf16 operands / f32 accumulation
    def ref_bf16(x, adj, parent, p):
        xb = x.astype(jnp.bfloat16)
        ab = adj.astype(jnp.bfloat16)
        w1s, w1n = p["w1_self"].astype(jnp.bfloat16), p["w1_nbr"].astype(jnp.bfloat16)
        w2s, w2n = p["w2_self"].astype(jnp.bfloat16), p["w2_nbr"].astype(jnp.bfloat16)
        ax = jnp.dot(ab, xb, preferred_element_type=jnp.float32)
        z1 = (jnp.dot(xb, w1s, preferred_element_type=jnp.float32)
              + jnp.dot(ax.astype(jnp.bfloat16), w1n, preferred_element_type=jnp.float32)
              + p["b1"])
        h1 = jnp.maximum(z1, 0.0)
        h1b = h1.astype(jnp.bfloat16)
        ah1 = jnp.dot(ab, h1b, preferred_element_type=jnp.float32)
        z2 = (jnp.dot(h1b, w2s, preferred_element_type=jnp.float32)
              + jnp.dot(ah1.astype(jnp.bfloat16), w2n, preferred_element_type=jnp.float32)
              + p["b2"])
        h2 = jnp.maximum(z2, 0.0)
        return h2[parent]

    ref = ref_bf16(x, adj, pool_parent, params)
    assert jnp.allclose(out, ref, atol=2e-3, rtol=2e-3), "mismatch vs bf16 reference"

    # coarse sanity check against the full-f32 reference (bf16 operand error only)
    ref1 = jnp.maximum(x @ w1_self + adj @ (x @ w1_nbr) + b1, 0.0)
    ref2 = jnp.maximum(ref1 @ w2_self + adj @ (ref1 @ w2_nbr) + b2, 0.0)
    ref_f32 = ref2[pool_parent]
    assert jnp.allclose(out, ref_f32, atol=5e-2, rtol=5e-2), "mismatch vs f32 reference"

    print("KERNEL_OK")
</pallas_src>

<mosaic_0001>
module attributes {stable_mosaic.version = 11 : i64} {
  func.func @_fused_block7_kernel(%arg0: memref<64xi32, #tpu.memory_space<smem>>, %arg1: memref<32x128xbf16, #tpu.memory_space<vmem>>, %arg2: memref<32x32xbf16, #tpu.memory_space<vmem>>, %arg3: memref<128x128xbf16, #tpu.memory_space<vmem>>, %arg4: memref<128x128xbf16, #tpu.memory_space<vmem>>, %arg5: memref<1x128xf32, #tpu.memory_space<vmem>>, %arg6: memref<128x128xbf16, #tpu.memory_space<vmem>>, %arg7: memref<128x128xbf16, #tpu.memory_space<vmem>>, %arg8: memref<1x128xf32, #tpu.memory_space<vmem>>, %arg9: memref<64x128xf32, #tpu.memory_space<vmem>>, %arg10: memref<32x128xf32, #tpu.memory_space<vmem>>) attributes {dimension_semantics = [], scalar_prefetch = 0 : i64, scratch_operands = 1 : i64, tpu.core_type = #tpu.core_type<tc>} {
    %c0 = arith.constant 0 : index
    %c0_0 = arith.constant 0 : index
    %0 = vector.load %arg1[%c0, %c0_0] : memref<32x128xbf16, #tpu.memory_space<vmem>>, vector<32x128xbf16>
    %c0_1 = arith.constant 0 : index
    %c0_2 = arith.constant 0 : index
    %1 = vector.load %arg2[%c0_1, %c0_2] : memref<32x32xbf16, #tpu.memory_space<vmem>>, vector<32x32xbf16>
    %cst = arith.constant dense<0.000000e+00> : vector<32x128xf32>
    %2 = tpu.matmul %1, %0, %cst {dimension_numbers = #tpu.dot_dimension_numbers<[1], [0], [0], [1], [0, 0, 1, 1], [], []>} : vector<32x32xbf16>, vector<32x128xbf16>, vector<32x128xf32> -> vector<32x128xf32>
    %c0_3 = arith.constant 0 : index
    %c0_4 = arith.constant 0 : index
    %3 = vector.load %arg3[%c0_3, %c0_4] : memref<128x128xbf16, #tpu.memory_space<vmem>>, vector<128x128xbf16>
    %cst_5 = arith.constant dense<0.000000e+00> : vector<32x128xf32>
    %4 = tpu.matmul %0, %3, %cst_5 {dimension_numbers = #tpu.dot_dimension_numbers<[1], [0], [0], [1], [0, 0, 1, 1], [], []>} : vector<32x128xbf16>, vector<128x128xbf16>, vector<32x128xf32> -> vector<32x128xf32>
    %5 = arith.truncf %2 : vector<32x128xf32> to vector<32x128xbf16>
    %c0_6 = arith.constant 0 : index
    %c0_7 = arith.constant 0 : index
    %6 = vector.load %arg4[%c0_6, %c0_7] : memref<128x128xbf16, #tpu.memory_space<vmem>>, vector<128x128xbf16>
    %cst_8 = arith.constant dense<0.000000e+00> : vector<32x128xf32>
    %7 = tpu.matmul %5, %6, %cst_8 {dimension_numbers = #tpu.dot_dimension_numbers<[1], [0], [0], [1], [0, 0, 1, 1], [], []>} : vector<32x128xbf16>, vector<128x128xbf16>, vector<32x128xf32> -> vector<32x128xf32>
    %8 = arith.addf %4, %7 : vector<32x128xf32>
    %c0_9 = arith.constant 0 : index
    %c0_10 = arith.constant 0 : index
    %9 = vector.load %arg5[%c0_9, %c0_10] : memref<1x128xf32, #tpu.memory_space<vmem>>, vector<1x128xf32>
    %10 = vector.broadcast %9 : vector<1x128xf32> to vector<32x128xf32>
    %11 = arith.addf %8, %10 : vector<32x128xf32>
    %cst_11 = arith.constant 0.000000e+00 : f32
    %12 = vector.broadcast %cst_11 : f32 to vector<32x128xf32>
    %13 = arith.maximumf %11, %12 : vector<32x128xf32>
    %14 = arith.truncf %13 : vector<32x128xf32> to vector<32x128xbf16>
    %cst_12 = arith.constant dense<0.000000e+00> : vector<32x128xf32>
    %15 = tpu.matmul %1, %14, %cst_12 {dimension_numbers = #tpu.dot_dimension_numbers<[1], [0], [0], [1], [0, 0, 1, 1], [], []>} : vector<32x32xbf16>, vector<32x128xbf16>, vector<32x128xf32> -> vector<32x128xf32>
    %c0_13 = arith.constant 0 : index
    %c0_14 = arith.constant 0 : index
    %16 = vector.load %arg6[%c0_13, %c0_14] : memref<128x128xbf16, #tpu.memory_space<vmem>>, vector<128x128xbf16>
    %cst_15 = arith.constant dense<0.000000e+00> : vector<32x128xf32>
    %17 = tpu.matmul %14, %16, %cst_15 {dimension_numbers = #tpu.dot_dimension_numbers<[1], [0], [0], [1], [0, 0, 1, 1], [], []>} : vector<32x128xbf16>, vector<128x128xbf16>, vector<32x128xf32> -> vector<32x128xf32>
    %18 = arith.truncf %15 : vector<32x128xf32> to vector<32x128xbf16>
    %c0_16 = arith.constant 0 : index
    %c0_17 = arith.constant 0 : index
    %19 = vector.load %arg7[%c0_16, %c0_17] : memref<128x128xbf16, #tpu.memory_space<vmem>>, vector<128x128xbf16>
    %cst_18 = arith.constant dense<0.000000e+00> : vector<32x128xf32>
    %20 = tpu.matmul %18, %19, %cst_18 {dimension_numbers = #tpu.dot_dimension_numbers<[1], [0], [0], [1], [0, 0, 1, 1], [], []>} : vector<32x128xbf16>, vector<128x128xbf16>, vector<32x128xf32> -> vector<32x128xf32>
    %21 = arith.addf %17, %20 : vector<32x128xf32>
    %c0_19 = arith.constant 0 : index
    %c0_20 = arith.constant 0 : index
    %22 = vector.load %arg8[%c0_19, %c0_20] : memref<1x128xf32, #tpu.memory_space<vmem>>, vector<1x128xf32>
    %23 = vector.broadcast %22 : vector<1x128xf32> to vector<32x128xf32>
    %24 = arith.addf %21, %23 : vector<32x128xf32>
    %cst_21 = arith.constant 0.000000e+00 : f32
    %25 = vector.broadcast %cst_21 : f32 to vector<32x128xf32>
    %26 = arith.maximumf %24, %25 : vector<32x128xf32>
    %c0_22 = arith.constant 0 : index
    %c0_23 = arith.constant 0 : index
    %27 = vector.load %arg10[%c0_22, %c0_23] : memref<32x128xf32, #tpu.memory_space<vmem>>, vector<32x128xf32>
    tpu.vector_store %arg10[%c0_22, %c0_23], %26 {strides = array<i32>} : memref<32x128xf32, #tpu.memory_space<vmem>>, vector<32x128xf32>,
    %c0_i32 = arith.constant 0 : i32
    %c64_i32 = arith.constant 64 : i32
    %28 = arith.addi %c0_i32, %c64_i32 : i32
    %c1_i32 = arith.constant 1 : i32
    scf.for %arg11 = %c0_i32 to %28 step %c1_i32  : i32 {
      %c1_i32_25 = arith.constant 1 : i32
      %29 = arith.muli %arg11, %c1_i32_25 : i32
      %c0_i32_26 = arith.constant 0 : i32
      %30 = arith.addi %c0_i32_26, %29 : i32
      %31 = arith.index_cast %30 : i32 to index
      %32 = memref.load %arg0[%31] : memref<64xi32, #tpu.memory_space<smem>>
      %33 = arith.index_cast %32 : i32 to index
      %c0_27 = arith.constant 0 : index
      %34 = vector.load %arg10[%33, %c0_27] : memref<32x128xf32, #tpu.memory_space<vmem>>, vector<1x128xf32>
      %35 = arith.index_cast %30 : i32 to index
      %c0_28 = arith.constant 0 : index
      %36 = vector.load %arg9[%35, %c0_28] : memref<64x128xf32, #tpu.memory_space<vmem>>, vector<1x128xf32>
      tpu.vector_store %arg9[%35, %c0_28], %34 {strides = array<i32>} : memref<64x128xf32, #tpu.memory_space<vmem>>, vector<1x128xf32>,
    }
    %c64_i32_24 = arith.constant 64 : i32
    return
  }
}

</mosaic_0001>

<bundles_post_ra>
// kernel: tpu_custom_call.1
= control target key start
LH: loop header
LB: loop body
LE: loop exit
PB: predicated region body
PF: predicated region fallthrough
CT: control target
= control target key end

     0   :  { %14 = vsyncpa [#allocation6], 0  ;;  %s1147_s0 = inlined_call_operand.hbm [shape: s32[64], index: 0, kind: input, shape index: {}]   ;;  %s1148_s1 = inlined_call_operand.hbm [shape: bf16[32,128], index: 1, kind: input, shape index: {}]   ;;  %s1149_s2 = inlined_call_operand.hbm [shape: bf16[32,32], index: 2, kind: input, shape index: {}]   ;;  %s1150_s3 = inlined_call_operand.hbm [shape: bf16[128,128], index: 3, kind: input, shape index: {}]   ;;  %s1151_s4 = inlined_call_operand.hbm [shape: bf16[128,128], index: 4, kind: input, shape index: {}]   ;;  %s1152_s5 = inlined_call_operand.vmem [shape: f32[1,128], index: 5, kind: input, shape index: {}]   ;;  %s1153_s6 = inlined_call_operand.hbm [shape: bf16[128,128], index: 6, kind: input, shape index: {}]   ;;  %s1154_s7 = inlined_call_operand.hbm [shape: bf16[128,128], index: 7, kind: input, shape index: {}]   ;;  %s1155_s8 = inlined_call_operand.vmem [shape: f32[1,128], index: 8, kind: input, shape index: {}]   ;;  %s1156_s9 = inlined_call_operand.hbm [shape: f32[64,128], index: 9, kind: output, shape index: {}]  }
   0x1   :  { %15 = vsyncpa [#allocation4], 0 }
   0x2   :  { %16 = vsyncpa [#allocation9], 0 }
   0x3   :  { %17 = vsyncpa [#allocation12], 0 }
   0x4   :  { %18 = vsyncpa [#allocation15], 0 }
   0x5   :  { %19 = vsyncpa [#allocation5], 0  ;;  %s46_s11 = sshll.u32 %s1149_s2, 4  ;;  %s1029_s12 = smov [#allocation8]   ;;  %s47_s11 = int_to_ptr.hbm [resolvable:$true] %s46_s11 }
   0x6   :  { %s48_s13 = sshll.u32 %s1029_s12, 4  ;;  %s72_s16 = sshll.u32 %s1151_s4, 4  ;;  %s49_s13 = int_to_ptr.vmem [resolvable:$true] %s48_s13  ;;  %s73_s16 = int_to_ptr.hbm [resolvable:$true] %s72_s16 }
   0x7   :  { %s1030_s17 = smov 64   ;;  %s1031_s18 = smov 4  }
   0x8   :  { %54 = dma.hbm_to_vmem [thread:$0]  %s47_s11, 256, %s49_s13, [#allocation9], %s1030_s17, %s1030_s17, %s1031_s18  }
   0x9   :  { %s1032_s19 = smov [#allocation11]   ;;  %s25_s2 = sshll.u32 %s1147_s0, 4  ;;  %s26_s2 = int_to_ptr.hbm [resolvable:$true] %s25_s2 }
   0xa   :  { %s74_s20 = sshll.u32 %s1032_s19, 4  ;;  %s33_s24 = sshll.u32 %s1148_s1, 4  ;;  %s75_s20 = int_to_ptr.vmem [resolvable:$true] %s74_s20  ;;  %s34_s24 = int_to_ptr.hbm [resolvable:$true] %s33_s24 }
   0xb   :  { %80 = dma.hbm_to_vmem [thread:$0]  %s73_s16, 1024, %s75_s20, [#allocation12], %s1030_s17, %s1030_s17, %s1031_s18  }
   0xc   :  { %s1033_s25 = smov [#allocation3]   ;;  %s1034_s26 = smov [#allocation7]  }
   0xd   :  { %28 = dma.hbm_to_smem %s26_s2, 16, %s1033_s25, [#allocation6]  }
   0xe   :  { %s35_s27 = sshll.u32 %s1034_s26, 4  ;;  %s59_s30 = sshll.u32 %s1150_s3, 4  ;;  %s36_s27 = int_to_ptr.vmem [resolvable:$true] %s35_s27  ;;  %s60_s30 = int_to_ptr.hbm [resolvable:$true] %s59_s30 }
   0xf   :  { %41 = dma.hbm_to_vmem [thread:$0]  %s34_s24, 256, %s36_s27, [#allocation4], %s1030_s17, %s1030_s17, %s1031_s18  }
  0x10   :  { %s87_s11 = sshll.u32 %s1153_s6, 4  ;;  %s1035_s1 = smov [#allocation10]   ;;  %s88_s11 = int_to_ptr.hbm [resolvable:$true] %s87_s11 }
  0x11   :  { %s61_s12 = sshll.u32 %s1035_s1, 4  ;;  %s1036_s13 = smov [#allocation13]   ;;  %s62_s12 = int_to_ptr.vmem [resolvable:$true] %s61_s12 }
  0x12   :  { %67 = dma.hbm_to_vmem [thread:$0]  %s60_s30, 1024, %s62_s12, [#allocation9], %s1030_s17, %s1030_s17, %s1031_s18  }
  0x13   :  { %s89_s3 = sshll.u32 %s1036_s13, 4  ;;  %s100_s16 = sshll.u32 %s1154_s7, 4  ;;  %s90_s3 = int_to_ptr.vmem [resolvable:$true] %s89_s3  ;;  %s101_s16 = int_to_ptr.hbm [resolvable:$true] %s100_s16 }
  0x14   :  { %95 = dma.hbm_to_vmem [thread:$0]  %s88_s11, 1024, %s90_s3, [#allocation12], %s1030_s17, %s1030_s17, %s1031_s18  }
  0x15   :  { %s1037_s6 = smov [#allocation14]  }
  0x16   :  { %s102_s19 = sshll.u32 %s1037_s6, 4  ;;  %s103_s19 = int_to_ptr.vmem [resolvable:$true] %s102_s19 }
  0x17   :  { %108 = dma.hbm_to_vmem [thread:$0]  %s101_s16, 1024, %s103_s19, [#allocation15], %s1030_s17, %s1030_s17, %s1031_s18  }
  0x18   :  { %1013 = dma.done.wait [#allocation6], 16  }
  0x19   :  { %1014 = vsyncadd [#allocation6], 4294967280 }
  0x1a   :  { %1015 = dma.done.wait [#allocation4], 256  }
  0x1b   :  { %1016 = vsyncadd [#allocation4], 4294967040 }
  0x1c   :  { %1017 = dma.done.wait [#allocation9], 1280  }
  0x1d   :  { %1018 = vsyncadd [#allocation9], 4294966016 }
  0x1e   :  { %1019 = dma.done.wait [#allocation12], 2048  }
  0x1f   :  { %1020 = vsyncadd [#allocation12], 4294965248 }
  0x20   :  { %1021 = dma.done.wait [#allocation15], 1024  }
  0x21   :  { %1022 = vsyncadd [#allocation15], 4294966272 }
  0x22   :  { %139 = sfence }
  0x23   :  { %v772_v0 = vld [vmem:[#allocation7 + $0x8] sm:$0xff]  ;;  %v782_v1 = vld [vmem:[#allocation10 + $0x38] sm:$0xff]  ;;  %v771_v2 = vld [vmem:[#allocation7] sm:$0xff]  ;;  %vm171_vm0 = vcmask 261120  }
  0x24   :  { %184 = vmatpush.bf16.msra.mxu0 %v772_v0  ;;  %v790_v3 = vld [vmem:[#allocation11 + $0x38] sm:$0xff]  ;;  %346 = vmatpush.bf16.msra.mxu2 %v782_v1  ;;  %v781_v4 = vld [vmem:[#allocation10 + $0x30] sm:$0xff]  ;;  %v780_v7 = vld [vmem:[#allocation10 + $0x28] sm:$0xff] }
  0x25   :  { %279 = vmatpush.bf16.msra.mxu1 %v790_v3  ;;  %v789_v5 = vld [vmem:[#allocation11 + $0x30] sm:$0xff]  ;;  %v788_v8 = vld [vmem:[#allocation11 + $0x28] sm:$0xff]  ;;  %v779_v9 = vld [vmem:[#allocation10 + $0x20] sm:$0xff] }
  0x26   :  { %v1130_v6 = vld [vmem:[#allocation8] sm:$0xff]  ;;  %v787_v10 = vld [vmem:[#allocation11 + $0x20] sm:$0xff]  ;;  %v778_v11 = vld [vmem:[#allocation10 + $0x18] sm:$0xff] }
  0x27   :  { %v786_v12 = vld [vmem:[#allocation11 + $0x18] sm:$0xff]  ;;  %v777_v13 = vld [vmem:[#allocation10 + $0x10] sm:$0xff]  ;;  %v776_v15 = vld [vmem:[#allocation10 + $0x8] sm:$0xff] }
  0x28   :  { %185 = vmatpush.bf16.msra.mxu0 %v771_v2  ;;  %347 = vmatpush.bf16.msra.mxu2 %v781_v4  ;;  %v774_v14 = vld [vmem:[#allocation8 + $0x8] sm:$0xff]  ;;  %v775_v16 = vld [vmem:[#allocation10] sm:$0xff]  ;;  %v785_v17 = vld [vmem:[#allocation11 + $0x10] sm:$0xff] }
  0x29   :  { %280 = vmatpush.bf16.msra.mxu1 %v789_v5  ;;  %v784_v18 = vld [vmem:[#allocation11 + $0x8] sm:$0xff]  ;;  %v783_v19 = vld [vmem:[#allocation11] sm:$0xff]  ;;  %v798_v48 = vld [vmem:[#allocation13 + $0x38] sm:$0xff] }
  0x2a   :  { %v827_v33 = vld [vmem:[%s1152_s5] ss:$0 sm:$0xff]  ;;  %v797_v50 = vld [vmem:[#allocation13 + $0x30] sm:$0xff]  ;;  %v796_v51 = vld [vmem:[#allocation13 + $0x28] sm:$0xff] }
  0x2b   :  { %639 = vmatmul.msk.bf16.vlgmr.msra.gmra.mxu0 %vm171_vm0, %v1130_v6  ;;  %v795_v52 = vld [vmem:[#allocation13 + $0x20] sm:$0xff]  ;;  %v794_v53 = vld [vmem:[#allocation13 + $0x18] sm:$0xff]  ;;  %v793_v54 = vld [vmem:[#allocation13 + $0x10] sm:$0xff] }
  0x2c   :  { %348 = vmatpush.bf16.msra.mxu2 %v780_v7  ;;  %v806_v55 = vld [vmem:[#allocation14 + $0x38] sm:$0xff]  ;;  %v792_v56 = vld [vmem:[#allocation13 + $0x8] sm:$0xff]  ;;  %v805_v57 = vld [vmem:[#allocation14 + $0x30] sm:$0xff] }
  0x2d   :  { %281 = vmatpush.bf16.msra.mxu1 %v788_v8  ;;  %480 = vmatpush.bf16.msrb.mxu0 %v806_v55  ;;  %v791_v58 = vld [vmem:[#allocation13] sm:$0xff]  ;;  %v804_v59 = vld [vmem:[#allocation14 + $0x28] sm:$0xff]  ;;  %v802_v61 = vld [vmem:[#allocation14 + $0x18] sm:$0xff] }
  0x2e   :  { %v803_v60 = vld [vmem:[#allocation14 + $0x20] sm:$0xff]  ;;  %v801_v62 = vld [vmem:[#allocation14 + $0x10] sm:$0xff]  ;;  %v800_v63 = vld [vmem:[#allocation14 + $0x8] sm:$0xff] }
  0x2f   :  { %v828_v8 = vld [vmem:[%s1155_s8] ss:$0 sm:$0xff]  ;;  %s1025_s8 = smov 0  }
  0x30   :  { %349 = vmatpush.bf16.msra.mxu2 %v779_v9 }
  0x31   :  { %282 = vmatpush.bf16.msra.mxu1 %v787_v10  ;;  %481 = vmatpush.bf16.msrb.mxu0 %v805_v57 }
  0x34   :  { %350 = vmatpush.bf16.msra.mxu2 %v778_v11 }
  0x35   :  { %283 = vmatpush.bf16.msra.mxu1 %v786_v12  ;;  %482 = vmatpush.bf16.msrb.mxu0 %v804_v59 }
  0x38   :  { %351 = vmatpush.bf16.msra.mxu2 %v777_v13 }
  0x39   :  { %284 = vmatpush.bf16.msra.mxu1 %v785_v17  ;;  %483 = vmatpush.bf16.msrb.mxu0 %v803_v60 }
  0x3b   :  { %640 = vmatmul.msk.bf16.gmra.mxu0 %vm171_vm0, %v774_v14 }
  0x3c   :  { %352 = vmatpush.bf16.msra.mxu2 %v776_v15 }
  0x3d   :  { %285 = vmatpush.bf16.msra.mxu1 %v784_v18  ;;  %484 = vmatpush.bf16.msrb.mxu0 %v802_v61 }
  0x40   :  { %353 = vmatpush.bf16.msra.mxu2 %v775_v16 }
  0x41   :  { %286 = vmatpush.bf16.msra.mxu1 %v783_v19  ;;  %485 = vmatpush.bf16.msrb.mxu0 %v801_v62 }
  0x43   :  { %354 = vmatmul.bf16.vlgmr.msra.gmra.mxu2 %v771_v2 }
  0x45   :  { %486 = vmatpush.bf16.msrb.mxu0 %v800_v63 }
  0x53   :  { %359 = vmatmul.bf16.gmra.mxu2 %v772_v0  ;;  %v799_v0 = vld [vmem:[#allocation14] sm:$0xff] }
  0x54   :  { %487 = vmatpush.bf16.msrb.mxu0 %v799_v0 }
  0xa8   :  { %v187_v20 = vpop.f32.mrf.mxu0 }
  0xb0   :  { %v189_v21 = vpop.f32.mrf.mxu0 }
  0xb1   :  { %v213_v22 = vpack.c.bf16 %v189_v21, %v187_v20 }
  0xb3   :  { %287 = vmatmul.bf16.vlgmr.msra.gmra.mxu1 %v213_v22 }
  0xb8   :  { %v192_v23 = vpop.f32.mrf.mxu0 }
  0xc0   :  { %v194_v24 = vpop.f32.mrf.mxu0 }
  0xc1   :  { %v214_v25 = vpack.c.bf16 %v194_v24, %v192_v23 }
  0xc3   :  { %292 = vmatmul.bf16.gmra.mxu1 %v214_v25 }
  0xc6   :  { %v355_v26 = vpop.f32.mrf.mxu2 }
  0xce   :  { %v357_v28 = vpop.f32.mrf.mxu2 }
  0xd6   :  { %v360_v30 = vpop.f32.mrf.mxu2 }
  0xde   :  { %v362_v35 = vpop.f32.mrf.mxu2 }
 0x130   :  { %v288_v27 = vpop.f32.mrf.mxu1 }
 0x131   :  { %v356_v37 = vadd.f32 %v355_v26, %v288_v27 }
 0x133   :  { %v369_v42 = vadd.f32 %v827_v33, %v356_v37 }
 0x135   :  { %v373_v47 = vmax.f32 %v369_v42, 0.0 }
 0x138   :  { %v290_v29 = vpop.f32.mrf.mxu1 }
 0x139   :  { %v358_v34 = vadd.f32 %v357_v28, %v290_v29 }
 0x13b   :  { %v370_v40 = vadd.f32 %v827_v33, %v358_v34 }
 0x13d   :  { %v374_v45 = vmax.f32 %v370_v40, 0.0 }
 0x13f   :  { %v377_v49 = vpack.c.bf16 %v374_v45, %v373_v47 }
 0x140   :  { %v293_v31 = vpop.f32.mrf.mxu1 }
 0x141   :  { %v361_v32 = vadd.f32 %v360_v30, %v293_v31 }
 0x143   :  { %v371_v38 = vadd.f32 %v827_v33, %v361_v32 }
 0x145   :  { %v375_v43 = vmax.f32 %v371_v38, 0.0 }
 0x148   :  { %v295_v36 = vpop.f32.mrf.mxu1 }
 0x149   :  { %v363_v39 = vadd.f32 %v362_v35, %v295_v36 }
 0x14b   :  { %v372_v41 = vadd.f32 %v827_v33, %v363_v39 }
 0x14d   :  { %v376_v44 = vmax.f32 %v372_v41, 0.0 }
 0x14f   :  { %v378_v46 = vpack.c.bf16 %v376_v44, %v375_v43 }
 0x151   :  { %385 = vmatpush.bf16.msra.mxu3 %v378_v46 }
 0x155   :  { %386 = vmatpush.bf16.msra.mxu3 %v377_v49 }
 0x158   :  { %705 = vmatmul.msk.bf16.vlgmr.msra.gmra.mxu3 %vm171_vm0, %v1130_v6 }
 0x159   :  { %547 = vmatpush.bf16.msrb.mxu3 %v798_v48 }
 0x15d   :  { %548 = vmatpush.bf16.msrb.mxu3 %v797_v50 }
 0x161   :  { %549 = vmatpush.bf16.msrb.mxu3 %v796_v51 }
 0x165   :  { %550 = vmatpush.bf16.msrb.mxu3 %v795_v52 }
 0x168   :  { %706 = vmatmul.msk.bf16.gmra.mxu3 %vm171_vm0, %v774_v14 }
 0x169   :  { %551 = vmatpush.bf16.msrb.mxu3 %v794_v53 }
 0x16d   :  { %552 = vmatpush.bf16.msrb.mxu3 %v793_v54 }
 0x171   :  { %553 = vmatpush.bf16.msrb.mxu3 %v792_v56 }
 0x175   :  { %554 = vmatpush.bf16.msrb.mxu3 %v791_v58 }
 0x178   :  { %555 = vmatmul.bf16.vlgmr.msrb.gmra.mxu3 %v377_v49 }
 0x188   :  { %560 = vmatmul.bf16.gmra.mxu3 %v378_v46 }
 0x1db   :  { %v388_v1 = vpop.f32.mrf.mxu3 }
 0x1e3   :  { %v390_v2 = vpop.f32.mrf.mxu3 }
 0x1e4   :  { %v414_v3 = vpack.c.bf16 %v390_v2, %v388_v1 }
 0x1e6   :  { %488 = vmatmul.bf16.vlgmr.msrb.gmra.mxu0 %v414_v3 }
 0x1eb   :  { %v393_v4 = vpop.f32.mrf.mxu3 }
 0x1f3   :  { %v395_v5 = vpop.f32.mrf.mxu3 }
 0x1f4   :  { %v415_v6 = vpack.c.bf16 %v395_v5, %v393_v4 }
 0x1f6   :  { %493 = vmatmul.bf16.gmra.mxu0 %v415_v6 }
 0x1fb   :  { %v556_v7 = vpop.f32.mrf.mxu3 }
 0x203   :  { %v558_v12 = vpop.f32.mrf.mxu3 }
 0x20b   :  { %v561_v18 = vpop.f32.mrf.mxu3 }
 0x213   :  { %v563_v23 = vpop.f32.mrf.mxu3 }
 0x263   :  { %v489_v9 = vpop.f32.mrf.mxu0 }
 0x264   :  { %v557_v10 = vadd.f32 %v556_v7, %v489_v9 }
 0x266   :  { %v570_v11 = vadd.f32 %v828_v8, %v557_v10 }
 0x268   :  { %v574_v13 = vmax.f32 %v570_v11, 0.0 }
 0x26a   :  { %578 = vst [vmem:[#allocation2] sm:$0xff] %v574_v13 }
 0x26b   :  { %v491_v14 = vpop.f32.mrf.mxu0 }
 0x26c   :  { %v559_v15 = vadd.f32 %v558_v12, %v491_v14 }
 0x26e   :  { %v571_v16 = vadd.f32 %v828_v8, %v559_v15 }
 0x270   :  { %v575_v17 = vmax.f32 %v571_v16, 0.0 }
 0x272   :  { %579 = vst [vmem:[#allocation2 + $0x8] sm:$0xff] %v575_v17 }
 0x273   :  { %v494_v19 = vpop.f32.mrf.mxu0 }
 0x274   :  { %v562_v20 = vadd.f32 %v561_v18, %v494_v19 }
 0x276   :  { %v572_v21 = vadd.f32 %v828_v8, %v562_v20 }
 0x278   :  { %v576_v22 = vmax.f32 %v572_v21, 0.0 }
 0x27a   :  { %580 = vst [vmem:[#allocation2 + $0x10] sm:$0xff] %v576_v22 }
 0x27b   :  { %v496_v24 = vpop.f32.mrf.mxu0 }
 0x27c   :  { %v564_v25 = vadd.f32 %v563_v23, %v496_v24 }
 0x27e   :  { %v573_v26 = vadd.f32 %v828_v8, %v564_v25 }
 0x280   :  { %v577_v27 = vmax.f32 %v573_v26, 0.0 }
 0x282   :  { %581 = vst [vmem:[#allocation2 + $0x18] sm:$0xff] %v577_v27 }
 0x283 LB: > { %s588_s20 = sld [smem:[#allocation3 + %s1027_s8]]  ;;  %s591_s22 = scalar_lea.vmem [#allocation16], %s1027_s8  ;;  %s1027_s8 = sphi %s1025_s8, %s587_s8  }
 0x284   : > { %s587_s8 = sadd.s32 1, %s1027_s8  }
 0x285   : > { %p584_p0 = scmp.ge.s32.totalorder %s587_s8, 64  }
 0x286   :  { %s599_s23 = sshll.u32 (%p584_p0), %s1156_s9, 4  ;;  %s1038_s24 = smov (%p584_p0), [#allocation16]   ;;  %s600_s23 = int_to_ptr.hbm [resolvable:$true] %s599_s23 }
 0x287   :  { %586 = sbr.rel (!%p584_p0) target bundleno = 643 (0x283), region = 93  ;;  %s597_s25 = sshll.u32 (%p584_p0), %s1038_s24, 4  ;;  %s598_s25 = int_to_ptr.vmem [resolvable:$true] %s597_s25 }
 0x288   :  { %s1039_s26 = smov (%p584_p0), 128   ;;  %s1040_s27 = smov (%p584_p0), 8  }
 0x289   : > { %s589_s21 = scalar_lea.vmem [#allocation2], %s588_s20 }
 0x28a   : > { %v590_v28 = vld [vmem:[%s589_s21] sm:$0x1] }
 0x28b   : > { %592 = vst [vmem:[%s591_s22] sm:$0x1] %v590_v28 }
 0x28c   :  { %605 = dma.vmem_to_hbm [thread:$0]  %s598_s25, 1024, %s600_s23, [#allocation5], %s1039_s26, %s1039_s26, %s1040_s27  }
 0x28d   :  { %1023 = dma.done.wait [#allocation5], 1024  }
 0x28e   :  { %1024 = vsyncadd [#allocation5], 4294966272 }
 0x28f   :  { %610 = vsyncpa [#allocation4], 1 }
 0x290   :  { %611 = vsyncpa [#allocation9], 1 }
 0x291   :  { %612 = vsyncpa [#allocation12], 1 }
 0x292   :  { %613 = vsyncpa [#allocation15], 1 }
 0x293   :  { %614 = vsyncpa [#allocation5], 1 }
 0x294   :  { %615 = vsyncpa [#allocation6], 1 }

</bundles_post_ra>
